<compile_context>
chip_gen: v6e
topology: v6e:2x2x1
jax: 0.10.0
libtpu: 0.0.40
codegen_flags: <defaults>
</compile_context>

<pallas_src>
import functools

import jax
import jax.numpy as jnp
from jax.experimental import pallas as pl
from jax.experimental.pallas import tpu as pltpu

LANE = 128                             # internal (hidden) dim padded to lane width
TILE_N_MAX = 512                       # max rows per grid step (multiple of 8 sublanes)
VMEM_BUDGET_BYTES = 32 * 1024 * 1024   # conservative: fits v7x 64 MiB/TC + scoped default


def _round_up(x, m):
    return ((x + m - 1) // m) * m


def mlp_kernel(x_ref, w1_ref, b1_ref, w2_ref, b2_ref, o_ref):
    # Cast the streamed f32 x tile to bf16 in-kernel (VPU work, hidden under DMA);
    # both matmuls run on the MXU with f32 accumulation.
    x = x_ref[...].astype(jnp.bfloat16)
    h = jnp.dot(x, w1_ref[...], preferred_element_type=jnp.float32)
    h = jnp.maximum(h + b1_ref[...], 0.0)            # bias + ReLU in f32 (VPU)
    o = jnp.dot(h.astype(jnp.bfloat16), w2_ref[...],
                preferred_element_type=jnp.float32)
    o_ref[...] = (o + b2_ref[...]).astype(o_ref.dtype)


def prepare_mlp_params(w1, b1, w2, b2):
    """One-time weight prep (call once, reuse across forwards).

    w1: (input_dim, hidden), w2: (hidden, output); biases (dim,) or (1, dim).
    Pads only the *internal* hidden dim to a lane-dense multiple of 128 (zero
    padding is exact through matmul/bias/ReLU) and casts weights to bf16 MXU
    operands, biases to f32. Input/output dims stay unpadded so x and the output
    need no per-call pad / cast / slice passes.
    """
    input_dim, hidden_dim = w1.shape
    output_dim = w2.shape[1]
    hid_p = _round_up(hidden_dim, LANE)

    w1_p = jnp.pad(w1, ((0, 0), (0, hid_p - hidden_dim))).astype(jnp.bfloat16)
    b1_p = jnp.pad(b1.reshape(1, hidden_dim),
                   ((0, 0), (0, hid_p - hidden_dim))).astype(jnp.float32)
    w2_p = jnp.pad(w2, ((0, hid_p - hidden_dim), (0, 0))).astype(jnp.bfloat16)
    b2_p = b2.reshape(1, output_dim).astype(jnp.float32)
    return w1_p, b1_p, w2_p, b2_p


def _vmem_footprint_bytes(tile_n, input_dim, hid_p, output_dim, out_itemsize):
    # Default pipeliner double-buffers every operand (including the constant weights).
    x_bufs = 2 * tile_n * input_dim * 4
    o_bufs = 2 * tile_n * output_dim * out_itemsize
    w_bufs = 2 * (input_dim * hid_p + hid_p * output_dim) * 2
    b_bufs = 2 * (hid_p + output_dim) * 4
    h_tmp = tile_n * hid_p * (4 + 2)        # f32 h + its bf16 copy for matmul #2
    return x_bufs + o_bufs + w_bufs + b_bufs + h_tmp


@functools.partial(jax.jit, static_argnames=("out_dtype",))
def mlp_forward(x, params, out_dtype=jnp.float32):
    """x: (N, input_dim) f32; params: output of prepare_mlp_params."""
    w1_p, b1_p, w2_p, b2_p = params
    n, input_dim = x.shape
    assert input_dim == w1_p.shape[0]
    hid_p = w1_p.shape[1]
    output_dim = w2_p.shape[1]
    out_itemsize = jnp.dtype(out_dtype).itemsize

    # Row tiling: big tiles (amortize the ~0.35 us/step overhead), but >= 2 grid
    # steps whenever N allows so both v7x TensorCores get work on the parallel axis.
    n_p = _round_up(max(n, 8), 8)
    tile_n = min(TILE_N_MAX, max(8, _round_up(pl.cdiv(n_p, 2), 8)))

    # v7x VMEM sizing (64 MiB/TC): shrink the row tile if the footprint would
    # exceed the conservative budget.
    while tile_n > 8 and _vmem_footprint_bytes(
            tile_n, input_dim, hid_p, output_dim, out_itemsize) > VMEM_BUDGET_BYTES:
        tile_n = max(8, _round_up(tile_n // 2, 8))
    # TODO(synk): at real model widths where the (double-buffered) weights alone
    # blow the budget, request pl.Buffered(1) on the constant weight/bias specs
    # (halves resident weight VMEM) and/or add a hidden-dim reduction grid axis
    # ("arbitrary", last in grid) with an f32 VMEM accumulator + pl.when
    # init/finalize instead of keeping both weight matrices fully resident.

    n_p = _round_up(n_p, tile_n)
    grid = (n_p // tile_n,)

    # Pad rows only when needed (no copy at all for tile-aligned N).
    x_in = x if n_p == n else jnp.pad(x, ((0, n_p - n), (0, 0)))

    flops = 2 * n_p * (input_dim * hid_p + hid_p * output_dim)
    bytes_accessed = (n_p * input_dim * 4              # x read as f32
                      + (w1_p.size + w2_p.size) * 2    # bf16 weights
                      + (b1_p.size + b2_p.size) * 4    # f32 biases
                      + n_p * output_dim * out_itemsize)

    out = pl.pallas_call(
        mlp_kernel,
        out_shape=jax.ShapeDtypeStruct((n_p, output_dim), out_dtype),
        grid=grid,
        in_specs=[
            # x: streamed row tiles (double-buffered; DMA overlaps MXU/VPU work).
            pl.BlockSpec((tile_n, input_dim), lambda i: (i, 0)),
            # Weights / biases: full blocks, VMEM-resident across the grid.
            pl.BlockSpec((input_dim, hid_p), lambda i: (0, 0)),
            pl.BlockSpec((1, hid_p), lambda i: (0, 0)),
            pl.BlockSpec((hid_p, output_dim), lambda i: (0, 0)),
            pl.BlockSpec((1, output_dim), lambda i: (0, 0)),
        ],
        out_specs=pl.BlockSpec((tile_n, output_dim), lambda i: (i, 0)),
        compiler_params=pltpu.CompilerParams(
            # Independent row tiles -> shard across v7x's two TensorCores.
            dimension_semantics=("parallel",),
        ),
        cost_estimate=pl.CostEstimate(
            flops=flops, bytes_accessed=bytes_accessed, transcendentals=0),
    )(x_in, w1_p, b1_p, w2_p, b2_p)

    # Output feature dim is never padded -> no column slice; row slice only if padded.
    return out if n_p == n else out[:n]


def init_linear_params(key, in_features, out_features, dtype=jnp.float32):
    """Matches torch.nn.Linear default init: U(-k, k), k = 1/sqrt(fan_in)."""
    kw, kb = jax.random.split(key)
    bound = 1.0 / (in_features ** 0.5)
    # Stored already transposed: (in_features, out_features)
    w = jax.random.uniform(kw, (in_features, out_features), dtype,
                           minval=-bound, maxval=bound)
    b = jax.random.uniform(kb, (1, out_features), dtype,
                           minval=-bound, maxval=bound)
    return w, b


if __name__ == "__main__":
    # Small shapes consistent with the module: N nodes x input_dim features.
    N, INPUT_DIM, HIDDEN_DIM, OUTPUT_DIM = 8, 16, 32, 16

    key = jax.random.PRNGKey(0)
    kx, k1, k2 = jax.random.split(key, 3)

    x = jax.random.normal(kx, (N, INPUT_DIM), jnp.float32)
    w1, b1 = init_linear_params(k1, INPUT_DIM, HIDDEN_DIM)
    w2, b2 = init_linear_params(k2, HIDDEN_DIM, OUTPUT_DIM)

    # One-time weight prep; reused by every forward call (amortized to zero).
    params = jax.block_until_ready(prepare_mlp_params(w1, b1, w2, b2))

    out = mlp_forward(x, params)
    out = jax.block_until_ready(out)
    assert out.shape == (N, OUTPUT_DIM)
    assert out.dtype == jnp.float32

    # Reference 1: same bf16 quantization as the kernel (tight tolerance).
    xb = x.astype(jnp.bfloat16).astype(jnp.float32)
    w1b = w1.astype(jnp.bfloat16).astype(jnp.float32)
    w2b = w2.astype(jnp.bfloat16).astype(jnp.float32)
    hb = jnp.maximum(xb @ w1b + b1, 0.0).astype(jnp.bfloat16).astype(jnp.float32)
    ref_q = hb @ w2b + b2
    assert jnp.allclose(out, ref_q, atol=5e-3, rtol=5e-3)

    # Reference 2: full f32 math (loose tolerance covers bf16 operand rounding).
    ref_f32 = jnp.maximum(x @ w1 + b1, 0.0) @ w2 + b2
    assert jnp.allclose(out, ref_f32, atol=1e-1, rtol=1e-1)

    # Exercise the non-tile-aligned-N path (row pad + slice) and bf16 output.
    x2 = jax.random.normal(kx, (5, INPUT_DIM), jnp.float32)
    out2 = jax.block_until_ready(mlp_forward(x2, params, out_dtype=jnp.bfloat16))
    ref2 = jnp.maximum(x2 @ w1 + b1, 0.0) @ w2 + b2
    assert out2.shape == (5, OUTPUT_DIM) and out2.dtype == jnp.bfloat16
    assert jnp.allclose(out2.astype(jnp.float32), ref2, atol=1.5e-1, rtol=1.5e-1)

    print("KERNEL_OK")
</pallas_src>

<mosaic_0001>
module attributes {stable_mosaic.version = 11 : i64} {
  func.func @mlp_kernel(%arg0: i32, %arg1: memref<8x16xf32, #tpu.memory_space<vmem>>, %arg2: memref<16x128xbf16, #tpu.memory_space<vmem>>, %arg3: memref<1x128xf32, #tpu.memory_space<vmem>>, %arg4: memref<128x16xbf16, #tpu.memory_space<vmem>>, %arg5: memref<1x16xf32, #tpu.memory_space<vmem>>, %arg6: memref<8x16xf32, #tpu.memory_space<vmem>>) attributes {dimension_semantics = [#tpu.dimension_semantics<parallel>], iteration_bounds = array<i64: 1>, scalar_prefetch = 0 : i64, scratch_operands = 0 : i64, tpu.core_type = #tpu.core_type<tc>, window_params = [{transform_indices = @transform_0, window_bounds = array<i64: 8, 16>}, {pipeline_mode = #tpu.pipeline_mode<synchronous>, transform_indices = @transform_1, window_bounds = array<i64: 16, 128>}, {pipeline_mode = #tpu.pipeline_mode<synchronous>, transform_indices = @transform_2, window_bounds = array<i64: 1, 128>}, {pipeline_mode = #tpu.pipeline_mode<synchronous>, transform_indices = @transform_3, window_bounds = array<i64: 128, 16>}, {pipeline_mode = #tpu.pipeline_mode<synchronous>, transform_indices = @transform_4, window_bounds = array<i64: 1, 16>}, {transform_indices = @transform_5, window_bounds = array<i64: 8, 16>}]} {
    %c0 = arith.constant 0 : index
    %c0_0 = arith.constant 0 : index
    %0 = vector.load %arg1[%c0, %c0_0] : memref<8x16xf32, #tpu.memory_space<vmem>>, vector<8x16xf32>
    %1 = arith.truncf %0 : vector<8x16xf32> to vector<8x16xbf16>
    %c0_1 = arith.constant 0 : index
    %c0_2 = arith.constant 0 : index
    %2 = vector.load %arg2[%c0_1, %c0_2] : memref<16x128xbf16, #tpu.memory_space<vmem>>, vector<16x128xbf16>
    %cst = arith.constant dense<0.000000e+00> : vector<8x128xf32>
    %3 = tpu.matmul %1, %2, %cst {dimension_numbers = #tpu.dot_dimension_numbers<[1], [0], [0], [1], [0, 0, 1, 1], [], []>} : vector<8x16xbf16>, vector<16x128xbf16>, vector<8x128xf32> -> vector<8x128xf32>
    %c0_3 = arith.constant 0 : index
    %c0_4 = arith.constant 0 : index
    %4 = vector.load %arg3[%c0_3, %c0_4] : memref<1x128xf32, #tpu.memory_space<vmem>>, vector<1x128xf32>
    %5 = vector.broadcast %4 : vector<1x128xf32> to vector<8x128xf32>
    %6 = arith.addf %3, %5 : vector<8x128xf32>
    %cst_5 = arith.constant 0.000000e+00 : f32
    %7 = vector.broadcast %cst_5 : f32 to vector<8x128xf32>
    %8 = arith.maximumf %6, %7 : vector<8x128xf32>
    %9 = arith.truncf %8 : vector<8x128xf32> to vector<8x128xbf16>
    %c0_6 = arith.constant 0 : index
    %c0_7 = arith.constant 0 : index
    %10 = vector.load %arg4[%c0_6, %c0_7] : memref<128x16xbf16, #tpu.memory_space<vmem>>, vector<128x16xbf16>
    %cst_8 = arith.constant dense<0.000000e+00> : vector<8x16xf32>
    %11 = tpu.matmul %9, %10, %cst_8 {dimension_numbers = #tpu.dot_dimension_numbers<[1], [0], [0], [1], [0, 0, 1, 1], [], []>} : vector<8x128xbf16>, vector<128x16xbf16>, vector<8x16xf32> -> vector<8x16xf32>
    %c0_9 = arith.constant 0 : index
    %c0_10 = arith.constant 0 : index
    %12 = vector.load %arg5[%c0_9, %c0_10] : memref<1x16xf32, #tpu.memory_space<vmem>>, vector<1x16xf32>
    %13 = vector.broadcast %12 : vector<1x16xf32> to vector<8x16xf32>
    %14 = arith.addf %11, %13 : vector<8x16xf32>
    %c0_11 = arith.constant 0 : index
    %c0_12 = arith.constant 0 : index
    %15 = vector.load %arg6[%c0_11, %c0_12] : memref<8x16xf32, #tpu.memory_space<vmem>>, vector<8x16xf32>
    tpu.vector_store %arg6[%c0_11, %c0_12], %14 {strides = array<i32>} : memref<8x16xf32, #tpu.memory_space<vmem>>, vector<8x16xf32>,
    return
  }
  func.func @transform_0(%arg0: i32) -> (i32, i32) {
    %c0_i32 = arith.constant 0 : i32
    %c0_i32_0 = arith.constant 0 : i32
    return %arg0, %c0_i32 : i32, i32
  }
  func.func @transform_1(%arg0: i32) -> (i32, i32) {
    %c0_i32 = arith.constant 0 : i32
    %c0_i32_0 = arith.constant 0 : i32
    %c0_i32_1 = arith.constant 0 : i32
    return %c0_i32, %c0_i32_0 : i32, i32
  }
  func.func @transform_2(%arg0: i32) -> (i32, i32) {
    %c0_i32 = arith.constant 0 : i32
    %c0_i32_0 = arith.constant 0 : i32
    %c0_i32_1 = arith.constant 0 : i32
    return %c0_i32, %c0_i32_0 : i32, i32
  }
  func.func @transform_3(%arg0: i32) -> (i32, i32) {
    %c0_i32 = arith.constant 0 : i32
    %c0_i32_0 = arith.constant 0 : i32
    %c0_i32_1 = arith.constant 0 : i32
    return %c0_i32, %c0_i32_0 : i32, i32
  }
  func.func @transform_4(%arg0: i32) -> (i32, i32) {
    %c0_i32 = arith.constant 0 : i32
    %c0_i32_0 = arith.constant 0 : i32
    %c0_i32_1 = arith.constant 0 : i32
    return %c0_i32, %c0_i32_0 : i32, i32
  }
  func.func @transform_5(%arg0: i32) -> (i32, i32) {
    %c0_i32 = arith.constant 0 : i32
    %c0_i32_0 = arith.constant 0 : i32
    return %arg0, %c0_i32 : i32, i32
  }
}

</mosaic_0001>

<bundles_post_ra>
// kernel: mlp_forward.1
= control target key start
LH: loop header
LB: loop body
LE: loop exit
PB: predicated region body
PF: predicated region fallthrough
CT: control target
= control target key end

     0   :  { %v294_v1 = vmov 0.0   ;;  %vm39_vm0 = vcmask 130048   ;;  %vm295_vm1 = vmmov 0   ;;  %s368_s0 = inlined_call_operand.vmem [shape: f32[8,16], index: 0, kind: input, shape index: {}]   ;;  %s369_s1 = inlined_call_operand.vmem [shape: bf16[16,128], index: 1, kind: input, shape index: {}]   ;;  %s370_s2 = inlined_call_operand.vmem [shape: f32[1,128], index: 2, kind: input, shape index: {}]   ;;  %s371_s3 = inlined_call_operand.vmem [shape: bf16[128,16], index: 3, kind: input, shape index: {}]   ;;  %s372_s4 = inlined_call_operand.vmem [shape: f32[1,16], index: 4, kind: input, shape index: {}]   ;;  %s373_s5 = inlined_call_operand.hbm [shape: f32[8,16], index: 5, kind: output, shape index: {}]  }
   0x1   :  { %v263_v0 = vld [vmem:[%s369_s1] sm:$0xff]   ;;  %234 = vmatprep.subr.bf16.mxu0 %v294_v1  ;;  %240 = vmatprep.subr.bf16.mxu1 %v294_v1  ;;  %v264_v3 = vld [vmem:[%s371_s3 + $0x38] sm:$0xff]   ;;  %v265_v5 = vld [vmem:[%s371_s3 + $0x30] sm:$0xff]  }
   0x2   :  { %v22_v2 = vld [vmem:[%s368_s0] sm:$0xff]  ;;  %235 = vmatpush3.bf16.msra.mxu0 %v263_v0  ;;  %236 = vmatprep.mubr.msk.bf16.mxu0 %vm295_vm1, %v294_v1  ;;  %v266_v6 = vld [vmem:[%s371_s3 + $0x28] sm:$0xff]  }
   0x3   :  { %v23_v4 = vpack.c.bf16 %v22_v2, %v22_v2  ;;  %241 = vmatpush3.bf16.msra.mxu1 %v264_v3  ;;  %256 = vmatprep.mubr.msk.bf16.mxu1 %vm295_vm1, %v294_v1 }
   0x4   :  { %242 = vmatprep.subr.bf16.mxu1 %v294_v1 }
   0x5   :  { %237 = vmatmul.mubr.msk.bf16.vlgmr.msra.gmra.mxu0 %vm39_vm0, %v23_v4 }
   0x7   :  { %243 = vmatpush3.bf16.msra.mxu1 %v265_v5 }
   0x8   :  { %244 = vmatprep.subr.bf16.mxu1 %v294_v1 }
   0x9   :  { %10 = vsyncpa [#allocation3], 0  ;;  %v267_v7 = vld [vmem:[%s371_s3 + $0x20] sm:$0xff]   ;;  %v268_v8 = vld [vmem:[%s371_s3 + $0x18] sm:$0xff]   ;;  %s296_s15 = smov [#allocation2]  }
   0xa   :  { %v269_v9 = vld [vmem:[%s371_s3 + $0x10] sm:$0xff]   ;;  %v270_v10 = vld [vmem:[%s371_s3 + $0x8] sm:$0xff]   ;;  %v271_v11 = vld [vmem:[%s371_s3] sm:$0xff]   ;;  %s203_s16 = sshll.u32 %s296_s15, 4  ;;  %s204_s16 = int_to_ptr.vmem [resolvable:$true] %s203_s16 }
   0xb   :  { %245 = vmatpush3.bf16.msra.mxu1 %v266_v6  ;;  %v211_v12 = vld [vmem:[%s370_s2] ss:$0 sm:$0xff]  ;;  %s272_s2 = scalar_lea.vmem %s204_s16, 128  ;;  %p277_p1 = scmp.lt.s32.totalorder %s204_s16, %s204_s16 }
   0xc   :  { %246 = vmatprep.subr.bf16.mxu1 %v294_v1  ;;  %v214_v20 = vld [vmem:[%s372_s4] ss:$0 sm:$0xff]  ;;  %p273_p0 = scmp.ne.s32.totalorder %s204_s16, %s272_s2  ;;  %p278_p2 = scmp.lt.s32.totalorder %s272_s2, %s272_s2 }
   0xe   :  { %p279_p3 = por %p278_p2, %p277_p1 }
   0xf   :  { %247 = vmatpush3.bf16.msra.mxu1 %v267_v7 }
  0x10   :  { %248 = vmatprep.subr.bf16.mxu1 %v294_v1  ;;  %p280_p4 = pnand %p279_p3, %p273_p0 }
  0x13   :  { %249 = vmatpush3.bf16.msra.mxu1 %v268_v8 }
  0x14   :  { %250 = vmatprep.subr.bf16.mxu1 %v294_v1 }
  0x17   :  { %251 = vmatpush3.bf16.msra.mxu1 %v269_v9 }
  0x18   :  { %252 = vmatprep.subr.bf16.mxu1 %v294_v1 }
  0x1b   :  { %253 = vmatpush3.bf16.msra.mxu1 %v270_v10 }
  0x1c   :  { %254 = vmatprep.subr.bf16.mxu1 %v294_v1 }
  0x1f   :  { %255 = vmatpush3.bf16.msra.mxu1 %v271_v11 }
  0xc5   :  { %v77_v13 = vpop.f32.mrf.mxu0 }
  0xc6   :  { %v78_v14 = vadd.f32 %v211_v12, %v77_v13 }
  0xc7   :  { %v238_v15 = vpop.f32.mrf.mxu0 }
  0xc8   :  { %v83_v16 = vmax.f32 %v78_v14, 0.0 }
  0xc9   :  { %v80_v17 = vpop.f32.mrf.mxu0 }
  0xca   :  { %v84_v18 = vpack.c.bf16 %v83_v16, %v83_v16 }
  0xcb   :  { %v239_v19 = vpop.f32.mrf.mxu0 }
  0xcc   :  { %257 = vmatmul.mubr.bf16.vlgmr.msra.gmra.mxu1 %v84_v18 }
 0x18c   :  { %v190_v21 = vpop.f32.mrf.mxu1 }
 0x18d   :  { %v191_v22 = vadd.f32 %v214_v20, %v190_v21 }
 0x18e   :  { %v258_v23 = vpop.f32.mrf.mxu1 }
 0x18f   :  { %196 = vst.msk [vmem:[#allocation2] sm:$0xff] %vm39_vm0, %v191_v22 }
 0x190   :  { %v193_v24 = vpop.f32.mrf.mxu1 }
 0x191   :  { %283 = shalt.err (!%p280_p4)
}
 0x192   :  { %206 = dma.vmem_to_hbm [thread:$0]  %s204_s16, 128, %s373_s5, [#allocation3]   ;;  %v259_v25 = vpop.f32.mrf.mxu1 }
 0x193   :  { %292 = dma.done.wait [#allocation3], 128  }
 0x194   :  { %293 = vsyncadd [#allocation3], 4294967168 }
 0x195   :  { %210 = vsyncpa [#allocation3], 1 }

</bundles_post_ra>
